<compile_context>
chip_gen: v7x
topology: tpu7x:2x2x1
jax: 0.10.0
libtpu: 0.0.40
codegen_flags: <defaults>
</compile_context>

<pallas_src>
import functools

import jax
import jax.numpy as jnp
from jax.experimental import pallas as pl
from jax.experimental.pallas import tpu as pltpu

IN_FEAT = 7
DENSE_HID = 64
OUT_RAW = 14
OUT_PAD = 128      # lane-dense padded output width
SUBLANES = 8       # batch is padded up to a multiple of this


def _lstm_dense_kernel(x_ref, wih_ref, whh_ref, bpack_ref, w1_ref, w2_ref,
                       out_ref, *, hidden, batch_pad, seq_len):
    H, B, T = hidden, batch_pad, seq_len

    # (1) Input projection (+ fused LSTM bias via the appended ones column)
    #     for ALL timesteps in a single MXU push: (T*B, F+1) @ (F+1, 4H).
    gx_all = jnp.dot(x_ref[...], wih_ref[...],
                     preferred_element_type=jnp.float32)          # (T*B, 4H)

    whh = whh_ref[...]                                            # (H, 4H)
    bp = bpack_ref[...]                                           # (2, 128)

    h = jnp.zeros((B, H), jnp.float32)
    c = jnp.zeros((B, H), jnp.float32)

    # (2) Fully-unrolled recurrence (T is a small static constant).
    #     Gate columns were permuted host-side to [i, f, o | g], so sigmoid
    #     covers only the first 3H lanes and tanh only the last H lanes.
    for t in range(T):
        gates = (gx_all[t * B:(t + 1) * B, :]
                 + jnp.dot(h, whh, preferred_element_type=jnp.float32))  # (B,4H)
        sg = jax.nn.sigmoid(gates[:, :3 * H])                     # [i | f | o]
        g_g = jnp.tanh(gates[:, 3 * H:])                          # g
        i_g = sg[:, 0 * H:1 * H]
        f_g = sg[:, 1 * H:2 * H]
        o_g = sg[:, 2 * H:3 * H]
        c = f_g * c + i_g * g_g
        h = o_g * jnp.tanh(c)

    # (3) Dense head on the last hidden state; desnormalize folded into w2/b2.
    d = jnp.tanh(jnp.dot(h, w1_ref[...], preferred_element_type=jnp.float32)
                 + bp[0:1, :DENSE_HID])                           # (B, 64)
    out_ref[...] = (jnp.dot(d, w2_ref[...],
                            preferred_element_type=jnp.float32)
                    + bp[1:2, :])                                 # (B, 128)


def prepare_params(w_ih, w_hh, b_ih, b_hh, w1, b1, w2, b2, *,
                   x_min, x_max, y_min, y_max):
    """Host-side one-time prep: fold normalize/desnormalize, fold the LSTM
    bias into an extra W_ih row, permute gate columns to [i,f,o|g], pack the
    dense biases, and lane-pad the output projection.

    x_min/x_max may be scalars or per-feature vectors; y_min/y_max may be
    scalars or per-output vectors.
    """
    H = w_hh.shape[1]
    F = w_ih.shape[1]

    # x_norm = a*x + c  (per-feature safe)
    a = jnp.broadcast_to(jnp.asarray(2.0 / (x_max - x_min), jnp.float32), (F,))
    c = jnp.broadcast_to(
        jnp.asarray(-2.0 * x_min / (x_max - x_min) - 1.0, jnp.float32), (F,))
    wih_t = (w_ih.T * a[:, None]).astype(jnp.float32)             # (F, 4H)
    bias = (b_ih + b_hh + c @ w_ih.T).astype(jnp.float32)         # (4H,)
    wih_aug = jnp.concatenate([wih_t, bias[None, :]], axis=0)     # (F+1, 4H)
    whh_t = w_hh.T.astype(jnp.float32)                            # (H, 4H)

    # Permute gate columns [i, f, g, o] -> [i, f, o, g].
    perm = jnp.concatenate([jnp.arange(0, 2 * H),
                            jnp.arange(3 * H, 4 * H),
                            jnp.arange(2 * H, 3 * H)])
    wih_aug = wih_aug[:, perm]
    whh_t = whh_t[:, perm]

    # desnorm(y) = s*y + t_off  (per-output safe)
    s = jnp.broadcast_to(jnp.asarray((y_max - y_min) / 2.0, jnp.float32),
                         (OUT_RAW,))
    t_off = jnp.broadcast_to(jnp.asarray((y_max + y_min) / 2.0, jnp.float32),
                             (OUT_RAW,))
    w2_fold = (w2.T * s[None, :]).astype(jnp.float32)             # (64, 14)
    b2_fold = (s * b2 + t_off).astype(jnp.float32)                # (14,)

    w2_pad = jnp.zeros((DENSE_HID, OUT_PAD), jnp.float32)
    w2_pad = w2_pad.at[:, :OUT_RAW].set(w2_fold)                  # (64, 128)

    # Packed dense-head biases: row0 = b1 (padded), row1 = folded b2 (padded).
    bpack = jnp.zeros((2, OUT_PAD), jnp.float32)
    bpack = bpack.at[0, :DENSE_HID].set(b1.astype(jnp.float32))
    bpack = bpack.at[1, :OUT_RAW].set(b2_fold)

    return (wih_aug, whh_t, bpack,
            w1.T.astype(jnp.float32),                             # (H, 64)
            w2_pad)                                               # (64, 128)


@functools.partial(jax.jit, static_argnames=())
def my_model_forward(x, params):
    """x: (B, T, 7) float32, params from prepare_params. Returns (B, 14)."""
    B, T, F = x.shape
    wih_aug, whh_t, bpack, w1_t, w2_pad = params
    H = whh_t.shape[0]

    # Pad the batch to a multiple of 8 (full sublane occupancy); pad rows are
    # garbage and sliced off below.
    BP = max(SUBLANES, ((B + SUBLANES - 1) // SUBLANES) * SUBLANES)
    x_p = jnp.zeros((BP, T, F), jnp.float32).at[:B].set(x.astype(jnp.float32))
    # Append a ones column (F=7 -> 8) so the fused LSTM bias rides the input
    # projection; time-major flatten so step t is rows [t*BP:(t+1)*BP].
    ones = jnp.ones((BP, T, 1), jnp.float32)
    x_flat = jnp.transpose(jnp.concatenate([x_p, ones], axis=-1),
                           (1, 0, 2)).reshape(T * BP, F + 1)

    kernel = functools.partial(_lstm_dense_kernel,
                               hidden=H, batch_pad=BP, seq_len=T)

    vmem = pltpu.MemorySpace.VMEM
    out_pad = pl.pallas_call(
        kernel,
        out_shape=jax.ShapeDtypeStruct((BP, OUT_PAD), jnp.float32),
        in_specs=[pl.BlockSpec(memory_space=vmem)] * 6,
        out_specs=pl.BlockSpec(memory_space=vmem),
    )(x_flat, wih_aug, whh_t, bpack, w1_t, w2_pad)

    return out_pad[:B, :OUT_RAW]


def _reference_forward(x, raw_params, *, x_min, x_max, y_min, y_max):
    """Pure-JAX reference of the PyTorch forward, from RAW (unfolded) params."""
    w_ih, w_hh, b_ih, b_hh, w1, b1, w2, b2 = raw_params
    B, T, F = x.shape
    H = w_hh.shape[1]
    xn = 2.0 * (x - x_min) / (x_max - x_min) - 1.0
    h = jnp.zeros((B, H), jnp.float32)
    c = jnp.zeros((B, H), jnp.float32)
    bias = b_ih + b_hh
    for t in range(T):
        g = xn[:, t, :] @ w_ih.T + h @ w_hh.T + bias
        i = jax.nn.sigmoid(g[:, :H])
        f = jax.nn.sigmoid(g[:, H:2 * H])
        gg = jnp.tanh(g[:, 2 * H:3 * H])
        o = jax.nn.sigmoid(g[:, 3 * H:])
        c = f * c + i * gg
        h = o * jnp.tanh(c)
    d = jnp.tanh(h @ w1.T + b1)
    y = d @ w2.T + b2
    return (y + 1.0) / 2.0 * (y_max - y_min) + y_min


if __name__ == "__main__":
    # Small deterministic setup consistent with the module:
    # units (hidden) = 32, seq len = 8, batch = 2, input features = 7, out = 14.
    B, T, F, H = 2, 8, IN_FEAT, 32
    x_min, x_max = -2.0, 2.0
    y_min, y_max = -1.5, 1.5

    key = jax.random.PRNGKey(0)
    keys = jax.random.split(key, 9)

    # Raw PyTorch-shaped parameters.
    w_ih = jax.random.normal(keys[0], (4 * H, F), jnp.float32) * 0.1   # weight_ih_l0
    w_hh = jax.random.normal(keys[1], (4 * H, H), jnp.float32) * 0.1   # weight_hh_l0
    b_ih = jax.random.normal(keys[2], (4 * H,), jnp.float32) * 0.1
    b_hh = jax.random.normal(keys[3], (4 * H,), jnp.float32) * 0.1
    w1 = jax.random.normal(keys[4], (DENSE_HID, H), jnp.float32) * 0.1  # Linear(units, 64)
    b1 = jax.random.normal(keys[5], (DENSE_HID,), jnp.float32) * 0.1
    w2 = jax.random.normal(keys[6], (OUT_RAW, DENSE_HID), jnp.float32) * 0.1  # Linear(64, 14)
    b2 = jax.random.normal(keys[7], (OUT_RAW,), jnp.float32) * 0.1

    raw_params = (w_ih, w_hh, b_ih, b_hh, w1, b1, w2, b2)
    params = prepare_params(w_ih, w_hh, b_ih, b_hh, w1, b1, w2, b2,
                            x_min=x_min, x_max=x_max, y_min=y_min, y_max=y_max)

    x = jax.random.uniform(keys[8], (B, T, F), jnp.float32,
                           minval=x_min, maxval=x_max)

    out = my_model_forward(x, params)
    out = jax.block_until_ready(out)

    ref = _reference_forward(x, raw_params, x_min=x_min, x_max=x_max,
                             y_min=y_min, y_max=y_max)
    assert out.shape == (B, OUT_RAW)
    assert jnp.allclose(out, ref, atol=1e-4, rtol=1e-4)

    print("KERNEL_OK")
</pallas_src>

<mosaic_0001>
module attributes {stable_mosaic.version = 11 : i64} {
  func.func @_lstm_dense_kernel(%arg0: memref<64x8xf32, #tpu.memory_space<vmem>>, %arg1: memref<8x128xf32, #tpu.memory_space<vmem>>, %arg2: memref<32x128xf32, #tpu.memory_space<vmem>>, %arg3: memref<2x128xf32, #tpu.memory_space<vmem>>, %arg4: memref<32x64xf32, #tpu.memory_space<vmem>>, %arg5: memref<64x128xf32, #tpu.memory_space<vmem>>, %arg6: memref<8x128xf32, #tpu.memory_space<vmem>>) attributes {dimension_semantics = [], scalar_prefetch = 0 : i64, scratch_operands = 0 : i64, tpu.core_type = #tpu.core_type<tc>} {
    %c0 = arith.constant 0 : index
    %c0_0 = arith.constant 0 : index
    %0 = vector.load %arg0[%c0, %c0_0] : memref<64x8xf32, #tpu.memory_space<vmem>>, vector<64x8xf32>
    %c0_1 = arith.constant 0 : index
    %c0_2 = arith.constant 0 : index
    %1 = vector.load %arg1[%c0_1, %c0_2] : memref<8x128xf32, #tpu.memory_space<vmem>>, vector<8x128xf32>
    %cst = arith.constant dense<0.000000e+00> : vector<64x128xf32>
    %2 = tpu.matmul %0, %1, %cst {dimension_numbers = #tpu.dot_dimension_numbers<[1], [0], [0], [1], [0, 0, 1, 1], [], []>} : vector<64x8xf32>, vector<8x128xf32>, vector<64x128xf32> -> vector<64x128xf32>
    %c0_3 = arith.constant 0 : index
    %c0_4 = arith.constant 0 : index
    %3 = vector.load %arg2[%c0_3, %c0_4] : memref<32x128xf32, #tpu.memory_space<vmem>>, vector<32x128xf32>
    %c0_5 = arith.constant 0 : index
    %c0_6 = arith.constant 0 : index
    %4 = vector.load %arg3[%c0_5, %c0_6] : memref<2x128xf32, #tpu.memory_space<vmem>>, vector<2x128xf32>
    %cst_7 = arith.constant 0.000000e+00 : f32
    %5 = vector.broadcast %cst_7 : f32 to vector<8x32xf32>
    %cst_8 = arith.constant 0.000000e+00 : f32
    %6 = vector.broadcast %cst_8 : f32 to vector<8x32xf32>
    %7 = vector.extract_strided_slice %2 {offsets = [0, 0], sizes = [8, 128], strides = [1, 1]} : vector<64x128xf32> to vector<8x128xf32>
    %cst_9 = arith.constant dense<0.000000e+00> : vector<8x128xf32>
    %8 = tpu.matmul %5, %3, %cst_9 {dimension_numbers = #tpu.dot_dimension_numbers<[1], [0], [0], [1], [0, 0, 1, 1], [], []>} : vector<8x32xf32>, vector<32x128xf32>, vector<8x128xf32> -> vector<8x128xf32>
    %9 = arith.addf %7, %8 : vector<8x128xf32>
    %10 = vector.extract_strided_slice %9 {offsets = [0, 0], sizes = [8, 96], strides = [1, 1]} : vector<8x128xf32> to vector<8x96xf32>
    %11 = arith.negf %10 : vector<8x96xf32>
    %12 = math.exp %11 : vector<8x96xf32>
    %cst_10 = arith.constant 1.000000e+00 : f32
    %13 = vector.broadcast %cst_10 : f32 to vector<8x96xf32>
    %14 = arith.addf %13, %12 : vector<8x96xf32>
    %15 = arith.divf %13, %14 : vector<8x96xf32>
    %16 = vector.extract_strided_slice %9 {offsets = [0, 96], sizes = [8, 32], strides = [1, 1]} : vector<8x128xf32> to vector<8x32xf32>
    %17 = math.tanh %16 : vector<8x32xf32>
    %18 = vector.extract_strided_slice %15 {offsets = [0, 0], sizes = [8, 32], strides = [1, 1]} : vector<8x96xf32> to vector<8x32xf32>
    %19 = vector.extract_strided_slice %15 {offsets = [0, 32], sizes = [8, 32], strides = [1, 1]} : vector<8x96xf32> to vector<8x32xf32>
    %20 = vector.extract_strided_slice %15 {offsets = [0, 64], sizes = [8, 32], strides = [1, 1]} : vector<8x96xf32> to vector<8x32xf32>
    %21 = arith.mulf %19, %6 : vector<8x32xf32>
    %22 = arith.mulf %18, %17 : vector<8x32xf32>
    %23 = arith.addf %21, %22 : vector<8x32xf32>
    %24 = math.tanh %23 : vector<8x32xf32>
    %25 = arith.mulf %20, %24 : vector<8x32xf32>
    %26 = vector.extract_strided_slice %2 {offsets = [8, 0], sizes = [8, 128], strides = [1, 1]} : vector<64x128xf32> to vector<8x128xf32>
    %cst_11 = arith.constant dense<0.000000e+00> : vector<8x128xf32>
    %27 = tpu.matmul %25, %3, %cst_11 {dimension_numbers = #tpu.dot_dimension_numbers<[1], [0], [0], [1], [0, 0, 1, 1], [], []>} : vector<8x32xf32>, vector<32x128xf32>, vector<8x128xf32> -> vector<8x128xf32>
    %28 = arith.addf %26, %27 : vector<8x128xf32>
    %29 = vector.extract_strided_slice %28 {offsets = [0, 0], sizes = [8, 96], strides = [1, 1]} : vector<8x128xf32> to vector<8x96xf32>
    %30 = arith.negf %29 : vector<8x96xf32>
    %31 = math.exp %30 : vector<8x96xf32>
    %cst_12 = arith.constant 1.000000e+00 : f32
    %32 = vector.broadcast %cst_12 : f32 to vector<8x96xf32>
    %33 = arith.addf %32, %31 : vector<8x96xf32>
    %34 = arith.divf %32, %33 : vector<8x96xf32>
    %35 = vector.extract_strided_slice %28 {offsets = [0, 96], sizes = [8, 32], strides = [1, 1]} : vector<8x128xf32> to vector<8x32xf32>
    %36 = math.tanh %35 : vector<8x32xf32>
    %37 = vector.extract_strided_slice %34 {offsets = [0, 0], sizes = [8, 32], strides = [1, 1]} : vector<8x96xf32> to vector<8x32xf32>
    %38 = vector.extract_strided_slice %34 {offsets = [0, 32], sizes = [8, 32], strides = [1, 1]} : vector<8x96xf32> to vector<8x32xf32>
    %39 = vector.extract_strided_slice %34 {offsets = [0, 64], sizes = [8, 32], strides = [1, 1]} : vector<8x96xf32> to vector<8x32xf32>
    %40 = arith.mulf %38, %23 : vector<8x32xf32>
    %41 = arith.mulf %37, %36 : vector<8x32xf32>
    %42 = arith.addf %40, %41 : vector<8x32xf32>
    %43 = math.tanh %42 : vector<8x32xf32>
    %44 = arith.mulf %39, %43 : vector<8x32xf32>
    %45 = vector.extract_strided_slice %2 {offsets = [16, 0], sizes = [8, 128], strides = [1, 1]} : vector<64x128xf32> to vector<8x128xf32>
    %cst_13 = arith.constant dense<0.000000e+00> : vector<8x128xf32>
    %46 = tpu.matmul %44, %3, %cst_13 {dimension_numbers = #tpu.dot_dimension_numbers<[1], [0], [0], [1], [0, 0, 1, 1], [], []>} : vector<8x32xf32>, vector<32x128xf32>, vector<8x128xf32> -> vector<8x128xf32>
    %47 = arith.addf %45, %46 : vector<8x128xf32>
    %48 = vector.extract_strided_slice %47 {offsets = [0, 0], sizes = [8, 96], strides = [1, 1]} : vector<8x128xf32> to vector<8x96xf32>
    %49 = arith.negf %48 : vector<8x96xf32>
    %50 = math.exp %49 : vector<8x96xf32>
    %cst_14 = arith.constant 1.000000e+00 : f32
    %51 = vector.broadcast %cst_14 : f32 to vector<8x96xf32>
    %52 = arith.addf %51, %50 : vector<8x96xf32>
    %53 = arith.divf %51, %52 : vector<8x96xf32>
    %54 = vector.extract_strided_slice %47 {offsets = [0, 96], sizes = [8, 32], strides = [1, 1]} : vector<8x128xf32> to vector<8x32xf32>
    %55 = math.tanh %54 : vector<8x32xf32>
    %56 = vector.extract_strided_slice %53 {offsets = [0, 0], sizes = [8, 32], strides = [1, 1]} : vector<8x96xf32> to vector<8x32xf32>
    %57 = vector.extract_strided_slice %53 {offsets = [0, 32], sizes = [8, 32], strides = [1, 1]} : vector<8x96xf32> to vector<8x32xf32>
    %58 = vector.extract_strided_slice %53 {offsets = [0, 64], sizes = [8, 32], strides = [1, 1]} : vector<8x96xf32> to vector<8x32xf32>
    %59 = arith.mulf %57, %42 : vector<8x32xf32>
    %60 = arith.mulf %56, %55 : vector<8x32xf32>
    %61 = arith.addf %59, %60 : vector<8x32xf32>
    %62 = math.tanh %61 : vector<8x32xf32>
    %63 = arith.mulf %58, %62 : vector<8x32xf32>
    %64 = vector.extract_strided_slice %2 {offsets = [24, 0], sizes = [8, 128], strides = [1, 1]} : vector<64x128xf32> to vector<8x128xf32>
    %cst_15 = arith.constant dense<0.000000e+00> : vector<8x128xf32>
    %65 = tpu.matmul %63, %3, %cst_15 {dimension_numbers = #tpu.dot_dimension_numbers<[1], [0], [0], [1], [0, 0, 1, 1], [], []>} : vector<8x32xf32>, vector<32x128xf32>, vector<8x128xf32> -> vector<8x128xf32>
    %66 = arith.addf %64, %65 : vector<8x128xf32>
    %67 = vector.extract_strided_slice %66 {offsets = [0, 0], sizes = [8, 96], strides = [1, 1]} : vector<8x128xf32> to vector<8x96xf32>
    %68 = arith.negf %67 : vector<8x96xf32>
    %69 = math.exp %68 : vector<8x96xf32>
    %cst_16 = arith.constant 1.000000e+00 : f32
    %70 = vector.broadcast %cst_16 : f32 to vector<8x96xf32>
    %71 = arith.addf %70, %69 : vector<8x96xf32>
    %72 = arith.divf %70, %71 : vector<8x96xf32>
    %73 = vector.extract_strided_slice %66 {offsets = [0, 96], sizes = [8, 32], strides = [1, 1]} : vector<8x128xf32> to vector<8x32xf32>
    %74 = math.tanh %73 : vector<8x32xf32>
    %75 = vector.extract_strided_slice %72 {offsets = [0, 0], sizes = [8, 32], strides = [1, 1]} : vector<8x96xf32> to vector<8x32xf32>
    %76 = vector.extract_strided_slice %72 {offsets = [0, 32], sizes = [8, 32], strides = [1, 1]} : vector<8x96xf32> to vector<8x32xf32>
    %77 = vector.extract_strided_slice %72 {offsets = [0, 64], sizes = [8, 32], strides = [1, 1]} : vector<8x96xf32> to vector<8x32xf32>
    %78 = arith.mulf %76, %61 : vector<8x32xf32>
    %79 = arith.mulf %75, %74 : vector<8x32xf32>
    %80 = arith.addf %78, %79 : vector<8x32xf32>
    %81 = math.tanh %80 : vector<8x32xf32>
    %82 = arith.mulf %77, %81 : vector<8x32xf32>
    %83 = vector.extract_strided_slice %2 {offsets = [32, 0], sizes = [8, 128], strides = [1, 1]} : vector<64x128xf32> to vector<8x128xf32>
    %cst_17 = arith.constant dense<0.000000e+00> : vector<8x128xf32>
    %84 = tpu.matmul %82, %3, %cst_17 {dimension_numbers = #tpu.dot_dimension_numbers<[1], [0], [0], [1], [0, 0, 1, 1], [], []>} : vector<8x32xf32>, vector<32x128xf32>, vector<8x128xf32> -> vector<8x128xf32>
    %85 = arith.addf %83, %84 : vector<8x128xf32>
    %86 = vector.extract_strided_slice %85 {offsets = [0, 0], sizes = [8, 96], strides = [1, 1]} : vector<8x128xf32> to vector<8x96xf32>
    %87 = arith.negf %86 : vector<8x96xf32>
    %88 = math.exp %87 : vector<8x96xf32>
    %cst_18 = arith.constant 1.000000e+00 : f32
    %89 = vector.broadcast %cst_18 : f32 to vector<8x96xf32>
    %90 = arith.addf %89, %88 : vector<8x96xf32>
    %91 = arith.divf %89, %90 : vector<8x96xf32>
    %92 = vector.extract_strided_slice %85 {offsets = [0, 96], sizes = [8, 32], strides = [1, 1]} : vector<8x128xf32> to vector<8x32xf32>
    %93 = math.tanh %92 : vector<8x32xf32>
    %94 = vector.extract_strided_slice %91 {offsets = [0, 0], sizes = [8, 32], strides = [1, 1]} : vector<8x96xf32> to vector<8x32xf32>
    %95 = vector.extract_strided_slice %91 {offsets = [0, 32], sizes = [8, 32], strides = [1, 1]} : vector<8x96xf32> to vector<8x32xf32>
    %96 = vector.extract_strided_slice %91 {offsets = [0, 64], sizes = [8, 32], strides = [1, 1]} : vector<8x96xf32> to vector<8x32xf32>
    %97 = arith.mulf %95, %80 : vector<8x32xf32>
    %98 = arith.mulf %94, %93 : vector<8x32xf32>
    %99 = arith.addf %97, %98 : vector<8x32xf32>
    %100 = math.tanh %99 : vector<8x32xf32>
    %101 = arith.mulf %96, %100 : vector<8x32xf32>
    %102 = vector.extract_strided_slice %2 {offsets = [40, 0], sizes = [8, 128], strides = [1, 1]} : vector<64x128xf32> to vector<8x128xf32>
    %cst_19 = arith.constant dense<0.000000e+00> : vector<8x128xf32>
    %103 = tpu.matmul %101, %3, %cst_19 {dimension_numbers = #tpu.dot_dimension_numbers<[1], [0], [0], [1], [0, 0, 1, 1], [], []>} : vector<8x32xf32>, vector<32x128xf32>, vector<8x128xf32> -> vector<8x128xf32>
    %104 = arith.addf %102, %103 : vector<8x128xf32>
    %105 = vector.extract_strided_slice %104 {offsets = [0, 0], sizes = [8, 96], strides = [1, 1]} : vector<8x128xf32> to vector<8x96xf32>
    %106 = arith.negf %105 : vector<8x96xf32>
    %107 = math.exp %106 : vector<8x96xf32>
    %cst_20 = arith.constant 1.000000e+00 : f32
    %108 = vector.broadcast %cst_20 : f32 to vector<8x96xf32>
    %109 = arith.addf %108, %107 : vector<8x96xf32>
    %110 = arith.divf %108, %109 : vector<8x96xf32>
    %111 = vector.extract_strided_slice %104 {offsets = [0, 96], sizes = [8, 32], strides = [1, 1]} : vector<8x128xf32> to vector<8x32xf32>
    %112 = math.tanh %111 : vector<8x32xf32>
    %113 = vector.extract_strided_slice %110 {offsets = [0, 0], sizes = [8, 32], strides = [1, 1]} : vector<8x96xf32> to vector<8x32xf32>
    %114 = vector.extract_strided_slice %110 {offsets = [0, 32], sizes = [8, 32], strides = [1, 1]} : vector<8x96xf32> to vector<8x32xf32>
    %115 = vector.extract_strided_slice %110 {offsets = [0, 64], sizes = [8, 32], strides = [1, 1]} : vector<8x96xf32> to vector<8x32xf32>
    %116 = arith.mulf %114, %99 : vector<8x32xf32>
    %117 = arith.mulf %113, %112 : vector<8x32xf32>
    %118 = arith.addf %116, %117 : vector<8x32xf32>
    %119 = math.tanh %118 : vector<8x32xf32>
    %120 = arith.mulf %115, %119 : vector<8x32xf32>
    %121 = vector.extract_strided_slice %2 {offsets = [48, 0], sizes = [8, 128], strides = [1, 1]} : vector<64x128xf32> to vector<8x128xf32>
    %cst_21 = arith.constant dense<0.000000e+00> : vector<8x128xf32>
    %122 = tpu.matmul %120, %3, %cst_21 {dimension_numbers = #tpu.dot_dimension_numbers<[1], [0], [0], [1], [0, 0, 1, 1], [], []>} : vector<8x32xf32>, vector<32x128xf32>, vector<8x128xf32> -> vector<8x128xf32>
    %123 = arith.addf %121, %122 : vector<8x128xf32>
    %124 = vector.extract_strided_slice %123 {offsets = [0, 0], sizes = [8, 96], strides = [1, 1]} : vector<8x128xf32> to vector<8x96xf32>
    %125 = arith.negf %124 : vector<8x96xf32>
    %126 = math.exp %125 : vector<8x96xf32>
    %cst_22 = arith.constant 1.000000e+00 : f32
    %127 = vector.broadcast %cst_22 : f32 to vector<8x96xf32>
    %128 = arith.addf %127, %126 : vector<8x96xf32>
    %129 = arith.divf %127, %128 : vector<8x96xf32>
    %130 = vector.extract_strided_slice %123 {offsets = [0, 96], sizes = [8, 32], strides = [1, 1]} : vector<8x128xf32> to vector<8x32xf32>
    %131 = math.tanh %130 : vector<8x32xf32>
    %132 = vector.extract_strided_slice %129 {offsets = [0, 0], sizes = [8, 32], strides = [1, 1]} : vector<8x96xf32> to vector<8x32xf32>
    %133 = vector.extract_strided_slice %129 {offsets = [0, 32], sizes = [8, 32], strides = [1, 1]} : vector<8x96xf32> to vector<8x32xf32>
    %134 = vector.extract_strided_slice %129 {offsets = [0, 64], sizes = [8, 32], strides = [1, 1]} : vector<8x96xf32> to vector<8x32xf32>
    %135 = arith.mulf %133, %118 : vector<8x32xf32>
    %136 = arith.mulf %132, %131 : vector<8x32xf32>
    %137 = arith.addf %135, %136 : vector<8x32xf32>
    %138 = math.tanh %137 : vector<8x32xf32>
    %139 = arith.mulf %134, %138 : vector<8x32xf32>
    %140 = vector.extract_strided_slice %2 {offsets = [56, 0], sizes = [8, 128], strides = [1, 1]} : vector<64x128xf32> to vector<8x128xf32>
    %cst_23 = arith.constant dense<0.000000e+00> : vector<8x128xf32>
    %141 = tpu.matmul %139, %3, %cst_23 {dimension_numbers = #tpu.dot_dimension_numbers<[1], [0], [0], [1], [0, 0, 1, 1], [], []>} : vector<8x32xf32>, vector<32x128xf32>, vector<8x128xf32> -> vector<8x128xf32>
    %142 = arith.addf %140, %141 : vector<8x128xf32>
    %143 = vector.extract_strided_slice %142 {offsets = [0, 0], sizes = [8, 96], strides = [1, 1]} : vector<8x128xf32> to vector<8x96xf32>
    %144 = arith.negf %143 : vector<8x96xf32>
    %145 = math.exp %144 : vector<8x96xf32>
    %cst_24 = arith.constant 1.000000e+00 : f32
    %146 = vector.broadcast %cst_24 : f32 to vector<8x96xf32>
    %147 = arith.addf %146, %145 : vector<8x96xf32>
    %148 = arith.divf %146, %147 : vector<8x96xf32>
    %149 = vector.extract_strided_slice %142 {offsets = [0, 96], sizes = [8, 32], strides = [1, 1]} : vector<8x128xf32> to vector<8x32xf32>
    %150 = math.tanh %149 : vector<8x32xf32>
    %151 = vector.extract_strided_slice %148 {offsets = [0, 0], sizes = [8, 32], strides = [1, 1]} : vector<8x96xf32> to vector<8x32xf32>
    %152 = vector.extract_strided_slice %148 {offsets = [0, 32], sizes = [8, 32], strides = [1, 1]} : vector<8x96xf32> to vector<8x32xf32>
    %153 = vector.extract_strided_slice %148 {offsets = [0, 64], sizes = [8, 32], strides = [1, 1]} : vector<8x96xf32> to vector<8x32xf32>
    %154 = arith.mulf %152, %137 : vector<8x32xf32>
    %155 = arith.mulf %151, %150 : vector<8x32xf32>
    %156 = arith.addf %154, %155 : vector<8x32xf32>
    %157 = math.tanh %156 : vector<8x32xf32>
    %158 = arith.mulf %153, %157 : vector<8x32xf32>
    %c0_25 = arith.constant 0 : index
    %c0_26 = arith.constant 0 : index
    %159 = vector.load %arg4[%c0_25, %c0_26] : memref<32x64xf32, #tpu.memory_space<vmem>>, vector<32x64xf32>
    %cst_27 = arith.constant dense<0.000000e+00> : vector<8x64xf32>
    %160 = tpu.matmul %158, %159, %cst_27 {dimension_numbers = #tpu.dot_dimension_numbers<[1], [0], [0], [1], [0, 0, 1, 1], [], []>} : vector<8x32xf32>, vector<32x64xf32>, vector<8x64xf32> -> vector<8x64xf32>
    %161 = vector.extract_strided_slice %4 {offsets = [0, 0], sizes = [1, 64], strides = [1, 1]} : vector<2x128xf32> to vector<1x64xf32>
    %162 = vector.broadcast %161 : vector<1x64xf32> to vector<8x64xf32>
    %163 = arith.addf %160, %162 : vector<8x64xf32>
    %164 = math.tanh %163 : vector<8x64xf32>
    %c0_28 = arith.constant 0 : index
    %c0_29 = arith.constant 0 : index
    %165 = vector.load %arg5[%c0_28, %c0_29] : memref<64x128xf32, #tpu.memory_space<vmem>>, vector<64x128xf32>
    %cst_30 = arith.constant dense<0.000000e+00> : vector<8x128xf32>
    %166 = tpu.matmul %164, %165, %cst_30 {dimension_numbers = #tpu.dot_dimension_numbers<[1], [0], [0], [1], [0, 0, 1, 1], [], []>} : vector<8x64xf32>, vector<64x128xf32>, vector<8x128xf32> -> vector<8x128xf32>
    %167 = vector.extract_strided_slice %4 {offsets = [1, 0], sizes = [1, 128], strides = [1, 1]} : vector<2x128xf32> to vector<1x128xf32>
    %168 = vector.broadcast %167 : vector<1x128xf32> to vector<8x128xf32>
    %169 = arith.addf %166, %168 : vector<8x128xf32>
    %c0_31 = arith.constant 0 : index
    %c0_32 = arith.constant 0 : index
    %170 = vector.load %arg6[%c0_31, %c0_32] : memref<8x128xf32, #tpu.memory_space<vmem>>, vector<8x128xf32>
    tpu.vector_store %arg6[%c0_31, %c0_32], %169 {strides = array<i32>} : memref<8x128xf32, #tpu.memory_space<vmem>>, vector<8x128xf32>,
    return
  }
}

</mosaic_0001>

<bundles_post_ra>
// kernel: my_model_forward.1
= control target key start
LH: loop header
LB: loop body
LE: loop exit
PB: predicated region body
PF: predicated region fallthrough
CT: control target
= control target key end

     0   :  { %vm32_vm0 = vcmask 64512   ;;  %v1498_v3 = vmov 0.0|0.0   ;;  %vm1499_vm1 = vmmov 0   ;;  %v1500_v4 = vmov 0.0   ;;  %s1502_s21 = smov 64   ;;  %s1748_s1 = inlined_call_operand.vmem [shape: f32[8,128], index: 1, kind: input, shape index: {}]   ;;  %s1749_s0 = inlined_call_operand.vmem [shape: f32[64,8], index: 0, kind: input, shape index: {}]   ;;  %s1750_s2 = inlined_call_operand.vmem [shape: f32[32,128], index: 2, kind: input, shape index: {}]   ;;  %s1751_s4 = inlined_call_operand.vmem [shape: f32[32,64], index: 4, kind: input, shape index: {}]   ;;  %s1752_s5 = inlined_call_operand.vmem [shape: f32[64,128], index: 5, kind: input, shape index: {}]   ;;  %s1753_s3 = inlined_call_operand.vmem [shape: f32[2,128], index: 3, kind: input, shape index: {}]   ;;  %s1754_s6 = inlined_call_operand.vmem [shape: f32[8,128], index: 6, kind: output, shape index: {}]  }
   0x1   :  { %v31_v0 = vld [vmem:[%s1748_s1] sm:$0xff]  ;;  %v24_v2 = vld [vmem:[%s1749_s0 + $0x8] sm:$0xff]  ;;  %1367 = vmatprep.subr.bf16.mxu1 %v1498_v3  ;;  %1262 = vmatprep.mubr.msk.f32.mxu1 %vm1499_vm1, %v1500_v4  ;;  %v25_v7 = vld [vmem:[%s1749_s0 + $0x10] sm:$0xff]  ;;  %vm167_vm2 = vcmask 261120   ;;  %vm1062_vm3 = vcmask 523264  }
   0x2   :  { %v23_v1 = vld [vmem:[%s1749_s0] sm:$0xff]  ;;  %1229 = vmatprep.subr.mxu0 %v31_v0  ;;  %v163_v6 = vld [vmem:[%s1750_s2 + $0x8] sm:$0xff]  ;;  %v164_v9 = vld [vmem:[%s1750_s2 + $0x10] sm:$0xff] }
   0x3   :  { %1231 = vmatprep.mubr.msk.f32.mxu0 %vm32_vm0, %v23_v1  ;;  %v162_v5 = vld [vmem:[%s1750_s2] sm:$0xff]  ;;  %1230 = vmatpush3.msra.mxu0 %v31_v0  ;;  %v165_v10 = vld [vmem:[%s1750_s2 + $0x18] sm:$0xff]  ;;  %v28_v14 = vld [vmem:[%s1749_s0 + $0x28] sm:$0xff] }
   0x4   :  { %v1560_v8 = vpack.c.bf16 %v163_v6, %v162_v5  ;;  %1232 = vmatmul.mubr.msk.f32.vlgmr.msra.gmra.mrb[0].mxu0 %vm32_vm0, %v24_v2  ;;  %1361 = vmatprep.subr.bf16.mxu0 %v1498_v3  ;;  %v26_v11 = vld [vmem:[%s1749_s0 + $0x18] sm:$0xff]  ;;  %v1575_v12 = vpack.c.bf16 %v165_v10, %v164_v9  ;;  %v27_v13 = vld [vmem:[%s1749_s0 + $0x20] sm:$0xff]  ;;  %v29_v15 = vld [vmem:[%s1749_s0 + $0x30] sm:$0xff] }
   0x5   :  { %1234 = vmatprep.mubr.msk.f32.mxu0 %vm32_vm0, %v25_v7  ;;  %v30_v16 = vld [vmem:[%s1749_s0 + $0x38] sm:$0xff]  ;;  %s1501_s0 = smov 32  }
   0x6   :  { %1363 = vmatpush3.bf16.msra.mxu0 %v1560_v8  ;;  %1369 = vmatpush3.bf16.msra.mxu1 %v1560_v8 }
   0x7   :  { %1364 = vmatprep.subr.bf16.mxu0 %v1498_v3  ;;  %1370 = vmatprep.subr.bf16.mxu1 %v1498_v3 }
   0x8   :  { %1235 = vmatmul.mubr.msk.f32.gmra.mrb[2].mxu0 %vm32_vm0, %v26_v11 }
   0x9   :  { %1237 = vmatprep.mubr.msk.f32.mxu0 %vm32_vm0, %v27_v13 }
   0xa   :  { %1366 = vmatpush3.bf16.msra.mxu0 %v1575_v12  ;;  %1372 = vmatpush3.bf16.msra.mxu1 %v1575_v12 }
   0xb   :  { %1373 = vmatprep.subr.bf16.mxu0 %v1498_v3  ;;  %1379 = vmatprep.subr.bf16.mxu1 %v1498_v3 }
   0xc   :  { %1238 = vmatmul.mubr.msk.f32.gmra.mrb[4].mxu0 %vm32_vm0, %v28_v14 }
   0xd   :  { %1240 = vmatprep.mubr.msk.f32.mxu0 %vm32_vm0, %v29_v15 }
  0x10   :  { %1241 = vmatmul.mubr.msk.f32.gmra.mrb[6].mxu0 %vm32_vm0, %v30_v16 }
  0x11   :  { %1251 = vmatprep.mubr.msk.f32.mxu0 %vm1499_vm1, %v1500_v4 }
  0x14   :  { %1252 = vmatmul.mubr.f32.vlgmr.msra.gmra.mrb[8].mxu0 %v1500_v4 }
  0x15   :  { %1375 = vmatpush3.bf16.msra.mxu0 %v1560_v8  ;;  %1273 = vmatprep.mubr.msk.f32.mxu0 %vm1499_vm1, %v1500_v4 }
  0x16   :  { %1376 = vmatprep.subr.bf16.mxu0 %v1498_v3 }
  0x19   :  { %1378 = vmatpush3.bf16.msra.mxu0 %v1575_v12 }
  0x1a   :  { %1385 = vmatprep.subr.bf16.mxu0 %v1498_v3 }
  0xd7   :  { %v1233_v17 = vpop.f32.mrb[0].mxu0 }
  0xd8   :  { %v123_v18 = vpop.f32.mrb[1].mxu0 }
  0xdb   :  { %v1610_v19 = vpop.f32.mrb[2].mxu0 }
  0xdc   :  { %v1612_v20 = vpop.f32.mrb[3].mxu0 }
  0xdf   :  { %v1614_v21 = vpop.f32.mrb[4].mxu0 }
  0xe0   :  { %v1616_v22 = vpop.f32.mrb[5].mxu0 }
  0xe3   :  { %v1618_v23 = vpop.f32.mrb[6].mxu0 }
  0xe4   :  { %v1620_v24 = vpop.f32.mrb[7].mxu0 }
  0xe7   :  { %v237_v25 = vpop.f32.mrb[8].mxu0 }
  0xe8   :  { %v241_v26 = vadd.f32 %v237_v25, %v123_v18  ;;  %v1253_v27 = vpop.f32.mrb[9].mxu0 }
  0xea   :  { %1432 = vtanh.f32 %v241_v26  ;;  %v1149_v29 = vmul.f32 -1.442695, %v241_v26 }
  0xec   :  { %1434 = vpow2.f32 %v1149_v29 }
  0xf4   :  { %v1433_v28 = vpop.eup %1432 }
  0xf5   :  { %251 = vrot.lane.b32.xlu0 %v1433_v28, %s1501_s0 }
  0xf6   :  { %v1435_v30 = vpop.eup %1434 }
  0xf7   :  { %v245_v31 = vadd.f32 1.0, %v1435_v30 }
  0xf9   :  { %1436 = vrcp.f32 %v245_v31 }
 0x103   :  { %v1437_v32 = vpop.eup %1436 }
 0x104   :  { %v249_v35 = vmul.f32 0.0, %v1437_v32 }
 0x167   :  { %v252_v33 = vpop.permute.xlu0 %251 }
 0x168   :  { %v254_v34 = vmul.f32 %v1437_v32, %v252_v33 }
 0x16a   :  { %256 = vrot.lane.b32.xlu0 %v254_v34, %s1501_s0 }
 0x1dc   :  { %v257_v36 = vpop.permute.xlu0 %256 }
 0x1dd   :  { %v259_v37 = vadd.f32 %v257_v36, %v249_v35 }
 0x1df   :  { %1438 = vtanh.f32 %v259_v37 }
 0x1e9   :  { %v1439_v38 = vpop.eup %1438 }
 0x1ea   :  { %262 = vrot.lane.b32.xlu1 %v1439_v38, %s1501_s0 }
 0x25c   :  { %v263_v39 = vpop.permute.xlu1 %262 }
 0x25d   :  { %v265_v40 = vmul.f32 %v1437_v32, %v263_v39 }
 0x25f   :  { %267 = vrot.lane.b32.xlu1 %v265_v40, %s1502_s21 }
 0x2d1   :  { %v268_v41 = vpop.permute.xlu1 %267 }
 0x2d2   :  { %1263 = vmatmul.mubr.msk.f32.vlgmr.msra.gmra.mrb[0].mxu1 %vm167_vm2, %v268_v41 }
 0x2d3   :  { %1381 = vmatpush3.bf16.msra.mxu1 %v1560_v8  ;;  %1284 = vmatprep.mubr.msk.f32.mxu1 %vm1499_vm1, %v1500_v4 }
 0x2d4   :  { %1382 = vmatprep.subr.bf16.mxu1 %v1498_v3 }
 0x2d7   :  { %1384 = vmatpush3.bf16.msra.mxu1 %v1575_v12 }
 0x2d8   :  { %1391 = vmatprep.subr.bf16.mxu1 %v1498_v3 }
 0x3a5   :  { %v337_v42 = vpop.f32.mrb[0].mxu1 }
 0x3a6   :  { %v341_v43 = vadd.f32 %v1233_v17, %v337_v42  ;;  %v1264_v44 = vpop.f32.mrb[1].mxu1 }
 0x3a8   :  { %1440 = vtanh.f32 %v341_v43  ;;  %v1151_v46 = vmul.f32 -1.442695, %v341_v43 }
 0x3aa   :  { %1442 = vpow2.f32 %v1151_v46 }
 0x3b2   :  { %v1441_v45 = vpop.eup %1440 }
 0x3b3   :  { %351 = vrot.lane.b32.xlu0 %v1441_v45, %s1501_s0 }
 0x3b4   :  { %v1443_v47 = vpop.eup %1442 }
 0x3b5   :  { %v345_v48 = vadd.f32 1.0, %v1443_v47 }
 0x3b7   :  { %1444 = vrcp.f32 %v345_v48 }
 0x3c1   :  { %v1445_v49 = vpop.eup %1444 }
 0x3c2   :  { %v349_v52 = vmul.f32 %v1445_v49, %v259_v37 }
 0x425   :  { %v352_v50 = vpop.permute.xlu0 %351 }
 0x426   :  { %v354_v51 = vmul.f32 %v1445_v49, %v352_v50 }
 0x428   :  { %356 = vrot.lane.b32.xlu1 %v354_v51, %s1501_s0 }
 0x49a   :  { %v357_v53 = vpop.permute.xlu1 %356 }
 0x49b   :  { %v359_v54 = vadd.f32 %v357_v53, %v349_v52 }
 0x49d   :  { %1446 = vtanh.f32 %v359_v54 }
 0x4a7   :  { %v1447_v55 = vpop.eup %1446 }
 0x4a8   :  { %362 = vrot.lane.b32.xlu0 %v1447_v55, %s1501_s0 }
 0x51a   :  { %v363_v56 = vpop.permute.xlu0 %362 }
 0x51b   :  { %v365_v57 = vmul.f32 %v1445_v49, %v363_v56 }
 0x51d   :  { %367 = vrot.lane.b32.xlu1 %v365_v57, %s1502_s21 }
 0x58f   :  { %v368_v58 = vpop.permute.xlu1 %367 }
 0x590   :  { %1274 = vmatmul.mubr.msk.f32.vlgmr.msra.gmra.mrb[10].mxu0 %vm167_vm2, %v368_v58 }
 0x591   :  { %1387 = vmatpush3.bf16.msra.mxu0 %v1560_v8  ;;  %1295 = vmatprep.mubr.msk.f32.mxu0 %vm1499_vm1, %v1500_v4 }
 0x592   :  { %1388 = vmatprep.subr.bf16.mxu0 %v1498_v3 }
 0x595   :  { %1390 = vmatpush3.bf16.msra.mxu0 %v1575_v12 }
 0x596   :  { %1397 = vmatprep.subr.bf16.mxu0 %v1498_v3 }
 0x663   :  { %v437_v59 = vpop.f32.mrb[10].mxu0 }
 0x664   :  { %v441_v60 = vadd.f32 %v437_v59, %v1612_v20  ;;  %v1275_v61 = vpop.f32.mrb[11].mxu0 }
 0x666   :  { %1448 = vtanh.f32 %v441_v60  ;;  %v1153_v63 = vmul.f32 -1.442695, %v441_v60 }
 0x668   :  { %1450 = vpow2.f32 %v1153_v63 }
 0x670   :  { %v1449_v62 = vpop.eup %1448 }
 0x671   :  { %451 = vrot.lane.b32.xlu0 %v1449_v62, %s1501_s0 }
 0x672   :  { %v1451_v0 = vpop.eup %1450 }
 0x673   :  { %v445_v1 = vadd.f32 1.0, %v1451_v0 }
 0x675   :  { %1452 = vrcp.f32 %v445_v1 }
 0x67f   :  { %v1453_v2 = vpop.eup %1452 }
 0x680   :  { %v449_v7 = vmul.f32 %v1453_v2, %v359_v54 }
 0x6e3   :  { %v452_v5 = vpop.permute.xlu0 %451 }
 0x6e4   :  { %v454_v6 = vmul.f32 %v1453_v2, %v452_v5 }
 0x6e6   :  { %456 = vrot.lane.b32.xlu1 %v454_v6, %s1501_s0 }
 0x758   :  { %v457_v9 = vpop.permute.xlu1 %456 }
 0x759   :  { %v459_v10 = vadd.f32 %v457_v9, %v449_v7 }
 0x75b   :  { %1454 = vtanh.f32 %v459_v10 }
 0x765   :  { %v1455_v11 = vpop.eup %1454 }
 0x766   :  { %462 = vrot.lane.b32.xlu0 %v1455_v11, %s1501_s0 }
 0x7d8   :  { %v463_v13 = vpop.permute.xlu0 %462 }
 0x7d9   :  { %v465_v14 = vmul.f32 %v1453_v2, %v463_v13 }
 0x7db   :  { %467 = vrot.lane.b32.xlu1 %v465_v14, %s1502_s21 }
 0x84d   :  { %v468_v15 = vpop.permute.xlu1 %467 }
 0x84e   :  { %1285 = vmatmul.mubr.msk.f32.vlgmr.msra.gmra.mrb[2].mxu1 %vm167_vm2, %v468_v15 }
 0x84f   :  { %1393 = vmatpush3.bf16.msra.mxu1 %v1560_v8  ;;  %1306 = vmatprep.mubr.msk.f32.mxu1 %vm1499_vm1, %v1500_v4 }
 0x850   :  { %1394 = vmatprep.subr.bf16.mxu1 %v1498_v3 }
 0x853   :  { %1396 = vmatpush3.bf16.msra.mxu1 %v1575_v12 }
 0x854   :  { %1403 = vmatprep.subr.bf16.mxu1 %v1498_v3 }
 0x921   :  { %v537_v16 = vpop.f32.mrb[2].mxu1 }
 0x922   :  { %v541_v17 = vadd.f32 %v1610_v19, %v537_v16  ;;  %v1286_v18 = vpop.f32.mrb[3].mxu1 }
 0x924   :  { %1456 = vtanh.f32 %v541_v17  ;;  %v1155_v25 = vmul.f32 -1.442695, %v541_v17 }
 0x926   :  { %1458 = vpow2.f32 %v1155_v25 }
 0x92e   :  { %v1457_v20 = vpop.eup %1456 }
 0x92f   :  { %551 = vrot.lane.b32.xlu0 %v1457_v20, %s1501_s0 }
 0x930   :  { %v1459_v26 = vpop.eup %1458 }
 0x931   :  { %v545_v27 = vadd.f32 1.0, %v1459_v26 }
 0x933   :  { %1460 = vrcp.f32 %v545_v27 }
 0x93d   :  { %v1461_v28 = vpop.eup %1460 }
 0x93e   :  { %v549_v31 = vmul.f32 %v1461_v28, %v459_v10 }
 0x9a1   :  { %v552_v29 = vpop.permute.xlu0 %551 }
 0x9a2   :  { %v554_v30 = vmul.f32 %v1461_v28, %v552_v29 }
 0x9a4   :  { %556 = vrot.lane.b32.xlu1 %v554_v30, %s1501_s0 }
 0xa16   :  { %v557_v32 = vpop.permute.xlu1 %556 }
 0xa17   :  { %v559_v33 = vadd.f32 %v557_v32, %v549_v31 }
 0xa19   :  { %1462 = vtanh.f32 %v559_v33 }
 0xa23   :  { %v1463_v19 = vpop.eup %1462 }
 0xa24   :  { %562 = vrot.lane.b32.xlu0 %v1463_v19, %s1501_s0 }
 0xa96   :  { %v563_v34 = vpop.permute.xlu0 %562 }
 0xa97   :  { %v565_v35 = vmul.f32 %v1461_v28, %v563_v34 }
 0xa99   :  { %567 = vrot.lane.b32.xlu1 %v565_v35, %s1502_s21 }
 0xb0b   :  { %v568_v36 = vpop.permute.xlu1 %567 }
 0xb0c   :  { %1296 = vmatmul.mubr.msk.f32.vlgmr.msra.gmra.mrb[12].mxu0 %vm167_vm2, %v568_v36 }
 0xb0d   :  { %1399 = vmatpush3.bf16.msra.mxu0 %v1560_v8  ;;  %1317 = vmatprep.mubr.msk.f32.mxu0 %vm1499_vm1, %v1500_v4 }
 0xb0e   :  { %1400 = vmatprep.subr.bf16.mxu0 %v1498_v3 }
 0xb11   :  { %1402 = vmatpush3.bf16.msra.mxu0 %v1575_v12 }
 0xb12   :  { %1409 = vmatprep.subr.bf16.mxu0 %v1498_v3 }
 0xbdf   :  { %v637_v37 = vpop.f32.mrb[12].mxu0 }
 0xbe0   :  { %v641_v38 = vadd.f32 %v637_v37, %v1616_v22  ;;  %v1297_v39 = vpop.f32.mrb[13].mxu0 }
 0xbe1   :  { %v967_v39 = vld [vmem:[%s1751_s4 + $0x8] sm:$0xff] }
 0xbe2   :  { %1464 = vtanh.f32 %v641_v38  ;;  %v1157_v41 = vmul.f32 -1.442695, %v641_v38 }
 0xbe4   :  { %1466 = vpow2.f32 %v1157_v41 }
 0xbec   :  { %v1465_v40 = vpop.eup %1464 }
 0xbed   :  { %651 = vrot.lane.b32.xlu0 %v1465_v40, %s1501_s0  ;;  %v968_v40 = vld [vmem:[%s1751_s4 + $0x10] sm:$0xff] }
 0xbee   :  { %v1467_v42 = vpop.eup %1466 }
 0xbef   :  { %v645_v43 = vadd.f32 1.0, %v1467_v42  ;;  %v969_v42 = vld [vmem:[%s1751_s4 + $0x18] sm:$0xff] }
 0xbf1   :  { %1468 = vrcp.f32 %v645_v43  ;;  %v1413_v43 = vpack.c.bf16 %v969_v42, %v968_v40 }
 0xbfb   :  { %v1469_v44 = vpop.eup %1468 }
 0xbfc   :  { %v649_v47 = vmul.f32 %v1469_v44, %v559_v33 }
 0xc5f   :  { %v652_v45 = vpop.permute.xlu0 %651 }
 0xc60   :  { %v654_v46 = vmul.f32 %v1469_v44, %v652_v45  ;;  %v1050_v45 = vld [vmem:[%s1752_s5] sm:$0xff] }
 0xc62   :  { %656 = vrot.lane.b32.xlu1 %v654_v46, %s1501_s0  ;;  %v1051_v46 = vld [vmem:[%s1752_s5 + $0x8] sm:$0xff] }
 0xcd4   :  { %v657_v48 = vpop.permute.xlu1 %656 }
 0xcd5   :  { %v659_v49 = vadd.f32 %v657_v48, %v649_v47  ;;  %v1416_v47 = vpack.c.bf16 %v1051_v46, %v1050_v45 }
 0xcd7   :  { %1470 = vtanh.f32 %v659_v49 }
 0xce1   :  { %v1471_v22 = vpop.eup %1470 }
 0xce2   :  { %662 = vrot.lane.b32.xlu0 %v1471_v22, %s1501_s0 }
 0xd54   :  { %v663_v50 = vpop.permute.xlu0 %662 }
 0xd55   :  { %v665_v51 = vmul.f32 %v1469_v44, %v663_v50  ;;  %v1052_v50 = vld [vmem:[%s1752_s5 + $0x10] sm:$0xff] }
 0xd57   :  { %667 = vrot.lane.b32.xlu1 %v665_v51, %s1502_s21  ;;  %v1053_v51 = vld [vmem:[%s1752_s5 + $0x18] sm:$0xff] }
 0xdc9   :  { %v668_v52 = vpop.permute.xlu1 %667 }
 0xdca   :  { %1307 = vmatmul.mubr.msk.f32.vlgmr.msra.gmra.mrb[4].mxu1 %vm167_vm2, %v668_v52  ;;  %v1419_v52 = vpack.c.bf16 %v1053_v51, %v1052_v50 }
 0xdcb   :  { %1405 = vmatpush3.bf16.msra.mxu1 %v1560_v8  ;;  %1328 = vmatprep.mubr.msk.f32.mxu1 %vm1499_vm1, %v1500_v4 }
 0xdcc   :  { %1406 = vmatprep.subr.bf16.mxu1 %v1498_v3 }
 0xdcf   :  { %1408 = vmatpush3.bf16.msra.mxu1 %v1575_v12 }
 0xdd0   :  { %1415 = vmatprep.subr.bf16.mxu1 %v1498_v3 }
 0xe9d   :  { %v737_v53 = vpop.f32.mrb[4].mxu1 }
 0xe9e   :  { %v741_v54 = vadd.f32 %v1614_v21, %v737_v53  ;;  %v1308_v55 = vpop.f32.mrb[5].mxu1  ;;  %v1054_v53 = vld [vmem:[%s1752_s5 + $0x20] sm:$0xff] }
 0xea0   :  { %1472 = vtanh.f32 %v741_v54  ;;  %v1159_v57 = vmul.f32 -1.442695, %v741_v54  ;;  %v1055_v54 = vld [vmem:[%s1752_s5 + $0x28] sm:$0xff] }
 0xea1   :  { %v1422_v55 = vpack.c.bf16 %v1055_v54, %v1054_v53 }
 0xea2   :  { %1474 = vpow2.f32 %v1159_v57  ;;  %v1057_v57 = vld [vmem:[%s1752_s5 + $0x38] sm:$0xff] }
 0xeaa   :  { %v1473_v56 = vpop.eup %1472 }
 0xeab   :  { %751 = vrot.lane.b32.xlu0 %v1473_v56, %s1501_s0  ;;  %v1056_v56 = vld [vmem:[%s1752_s5 + $0x30] sm:$0xff] }
 0xeac   :  { %v1475_v8 = vpop.eup %1474 }
 0xead   :  { %v745_v58 = vadd.f32 1.0, %v1475_v8  ;;  %v1425_v8 = vpack.c.bf16 %v1057_v57, %v1056_v56 }
 0xeaf   :  { %1476 = vrcp.f32 %v745_v58  ;;  %v970_v58 = vlaneseq }
 0xeb9   :  { %v1477_v59 = vpop.eup %1476 }
 0xeba   :  { %v749_v12 = vmul.f32 %v1477_v59, %v659_v49 }
 0xf1d   :  { %v752_v60 = vpop.permute.xlu0 %751 }
 0xf1e   :  { %v754_v61 = vmul.f32 %v1477_v59, %v752_v60 }
 0xf20   :  { %756 = vrot.lane.b32.xlu1 %v754_v61, %s1501_s0  ;;  %v166_v61 = vld [vmem:[%s1753_s3] sm:$0x3] }
 0xf92   :  { %v757_v62 = vpop.permute.xlu1 %756 }
 0xf93   :  { %v759_v63 = vadd.f32 %v757_v62, %v749_v12 }
 0xf95   :  { %1478 = vtanh.f32 %v759_v63 }
 0xf9f   :  { %v1479_v21 = vpop.eup %1478 }
 0xfa0   :  { %762 = vrot.lane.b32.xlu0 %v1479_v21, %s1501_s0 }
0x1012   :  { %v763_v0 = vpop.permute.xlu0 %762 }
0x1013   :  { %v765_v1 = vmul.f32 %v1477_v59, %v763_v0  ;;  %v971_v59 = vshrl.u32 %v970_v58, 7 }
0x1015   :  { %767 = vrot.lane.b32.xlu1 %v765_v1, %s1502_s21  ;;  %v972_v60 = vsub.s32 0, %v971_v59  ;;  %v1060_v1 = vsub.s32 1, %v971_v59 }
0x1017   :  { %v973_v12 = vrot.slane %v166_v61, %v972_v60 }
0x1087   :  { %v768_v2 = vpop.permute.xlu1 %767 }
0x1088   :  { %1318 = vmatmul.mubr.msk.f32.vlgmr.msra.gmra.mrb[14].mxu0 %vm167_vm2, %v768_v2  ;;  %v1061_v2 = vrot.slane %v166_v61, %v1060_v1 }
0x1089   :  { %1339 = vmatprep.mubr.msk.f32.mxu0 %vm1499_vm1, %v1500_v4 }
0x115b   :  { %v837_v5 = vpop.f32.mrb[14].mxu0 }
0x115c   :  { %v841_v6 = vadd.f32 %v837_v5, %v1620_v24  ;;  %v1319_v7 = vpop.f32.mrb[15].mxu0 }
0x115e   :  { %1480 = vtanh.f32 %v841_v6  ;;  %v1161_v10 = vmul.f32 -1.442695, %v841_v6 }
0x1160   :  { %1482 = vpow2.f32 %v1161_v10 }
0x1168   :  { %v1481_v9 = vpop.eup %1480 }
0x1169   :  { %851 = vrot.lane.b32.xlu0 %v1481_v9, %s1501_s0 }
0x116a   :  { %v1483_v11 = vpop.eup %1482 }
0x116b   :  { %v845_v13 = vadd.f32 1.0, %v1483_v11 }
0x116d   :  { %1484 = vrcp.f32 %v845_v13 }
0x1177   :  { %v1485_v14 = vpop.eup %1484 }
0x1178   :  { %v849_v17 = vmul.f32 %v1485_v14, %v759_v63 }
0x11db   :  { %v852_v15 = vpop.permute.xlu0 %851 }
0x11dc   :  { %v854_v16 = vmul.f32 %v1485_v14, %v852_v15 }
0x11de   :  { %856 = vrot.lane.b32.xlu1 %v854_v16, %s1501_s0 }
0x1250   :  { %v857_v18 = vpop.permute.xlu1 %856 }
0x1251   :  { %v859_v20 = vadd.f32 %v857_v18, %v849_v17 }
0x1253   :  { %1486 = vtanh.f32 %v859_v20 }
0x125d   :  { %v1487_v24 = vpop.eup %1486 }
0x125e   :  { %862 = vrot.lane.b32.xlu0 %v1487_v24, %s1501_s0 }
0x12d0   :  { %v863_v25 = vpop.permute.xlu0 %862 }
0x12d1   :  { %v865_v26 = vmul.f32 %v1485_v14, %v863_v25 }
0x12d3   :  { %867 = vrot.lane.b32.xlu1 %v865_v26, %s1502_s21 }
0x1345   :  { %v868_v27 = vpop.permute.xlu1 %867 }
0x1346   :  { %1329 = vmatmul.mubr.msk.f32.vlgmr.msra.gmra.mrb[6].mxu1 %vm167_vm2, %v868_v27 }
0x1347   :  { %1358 = vmatprep.mubr.msk.f32.mxu1 %vm1499_vm1, %v1500_v4  ;;  %1417 = vmatpush3.bf16.msra.mxu1 %v1416_v47 }
0x1348   :  { %1418 = vmatprep.subr.bf16.mxu1 %v1498_v3 }
0x134b   :  { %1420 = vmatpush3.bf16.msra.mxu1 %v1419_v52 }
0x134c   :  { %1421 = vmatprep.subr.bf16.mxu1 %v1498_v3 }
0x134f   :  { %1423 = vmatpush3.bf16.msra.mxu1 %v1422_v55 }
0x1350   :  { %1424 = vmatprep.subr.bf16.mxu1 %v1498_v3 }
0x1353   :  { %1426 = vmatpush3.bf16.msra.mxu1 %v1425_v8 }
0x1419   :  { %v937_v28 = vpop.f32.mrb[6].mxu1 }
0x141a   :  { %v941_v29 = vadd.f32 %v1618_v23, %v937_v28  ;;  %v1330_v30 = vpop.f32.mrb[7].mxu1  ;;  %v966_v23 = vld [vmem:[%s1751_s4] sm:$0xff] }
0x141b   :  { %v1410_v41 = vpack.c.bf16 %v967_v39, %v966_v23 }
0x141c   :  { %1488 = vtanh.f32 %v941_v29  ;;  %v1163_v32 = vmul.f32 -1.442695, %v941_v29 }
0x141d   :  { %1411 = vmatpush3.bf16.msra.mxu0 %v1410_v41 }
0x141e   :  { %1490 = vpow2.f32 %v1163_v32  ;;  %1412 = vmatprep.subr.bf16.mxu0 %v1498_v3 }
0x1421   :  { %1414 = vmatpush3.bf16.msra.mxu0 %v1413_v43 }
0x1426   :  { %v1489_v31 = vpop.eup %1488 }
0x1427   :  { %951 = vrot.lane.b32.xlu0 %v1489_v31, %s1501_s0 }
0x1428   :  { %v1491_v33 = vpop.eup %1490 }
0x1429   :  { %v945_v19 = vadd.f32 1.0, %v1491_v33 }
0x142b   :  { %1492 = vrcp.f32 %v945_v19 }
0x1435   :  { %v1493_v34 = vpop.eup %1492 }
0x1436   :  { %v949_v37 = vmul.f32 %v1493_v34, %v859_v20 }
0x1499   :  { %v952_v35 = vpop.permute.xlu0 %951 }
0x149a   :  { %v954_v36 = vmul.f32 %v1493_v34, %v952_v35 }
0x149c   :  { %956 = vrot.lane.b32.xlu1 %v954_v36, %s1501_s0 }
0x150e   :  { %v957_v4 = vpop.permute.xlu1 %956 }
0x150f   :  { %v959_v38 = vadd.f32 %v957_v4, %v949_v37 }
0x1511   :  { %1494 = vtanh.f32 %v959_v38 }
0x151b   :  { %v1495_v44 = vpop.eup %1494 }
0x151c   :  { %962 = vrot.lane.b32.xlu0 %v1495_v44, %s1501_s0 }
0x158e   :  { %v963_v48 = vpop.permute.xlu0 %962 }
0x158f   :  { %v965_v49 = vmul.f32 %v1493_v34, %v963_v48 }
0x1591   :  { %975 = vrot.lane.b32.xlu1 %v965_v49, %s1502_s21 }
0x1603   :  { %v976_v22 = vpop.permute.xlu1 %975 }
0x1604   :  { %1340 = vmatmul.mubr.msk.f32.vlgmr.msra.gmra.mrb[16].mxu0 %vm167_vm2, %v976_v22 }
0x16d7   :  { %v1045_v62 = vpop.f32.mrb[16].mxu0 }
0x16d8   :  { %v1046_v63 = vadd.f32 %v1045_v62, %v973_v12  ;;  %v1341_v21 = vpop.f32.mrb[17].mxu0 }
0x16da   :  { %1496 = vtanh.f32 %v1046_v63 }
0x16e4   :  { %v1497_v0 = vpop.eup %1496 }
0x16e5   :  { %1359 = vmatmul.mubr.msk.f32.vlgmr.msra.gmra.mrb[8].mxu1 %vm1062_vm3, %v1497_v0 }
0x17b8   :  { %v1132_v5 = vpop.f32.mrb[8].mxu1 }
0x17b9   :  { %v1133_v3 = vadd.f32 %v1132_v5, %v1061_v2  ;;  %v1360_v6 = vpop.f32.mrb[9].mxu1 }
0x17bb   :  { %1136 = vst [vmem:[%s1754_s6] sm:$0xff] %v1133_v3 }

</bundles_post_ra>
